<compile_context>
chip_gen: v7x
topology: tpu7x:2x2x1
jax: 0.10.0
libtpu: 0.0.40
codegen_flags: <defaults>
</compile_context>

<pallas_src>
import functools
import math

import jax
import jax.numpy as jnp
from jax.experimental import pallas as pl
from jax.experimental.pallas import tpu as pltpu

_LANE = 128
_SUBLANE = 8


def _round_up(a, b):
    return (a + b - 1) // b * b


def _vmem_block_bytes(shape, itemsize):
    """VMEM footprint of one buffer, including (8, 128) tile padding."""
    shape = tuple(shape)
    if len(shape) == 1:
        shape = (1,) + shape
    lead = 1
    for d in shape[:-2]:
        lead *= d
    return lead * _round_up(shape[-2], _SUBLANE) * _round_up(shape[-1], _LANE) * itemsize


# --------------------------------- kernels ----------------------------------

def _gcn_kernel_fused(x_ref, adj_ref, w_ref, b_ref, o_ref):
    """Collapsed-reduction kernel: full (adj @ x) contraction per row tile.

    x_ref:   (1, N, Fin)        per-batch resident
    adj_ref: (1, TM, N)         streamed adjacency row tile (native dtype)
    w_ref:   (Fin, Fout) f32    resident
    b_ref:   (1, Fout)   f32    resident
    o_ref:   (1, TM, Fout)
    """
    ax = jnp.dot(adj_ref[0], x_ref[0], preferred_element_type=jnp.float32)
    out = jnp.dot(ax, w_ref[...], preferred_element_type=jnp.float32)
    out = out + b_ref[...]
    out = jnp.where(out >= 0, out, 0.2 * out)            # LeakyReLU(0.2)
    # TODO(synk): Dropout(p=0.1) omitted (eval-mode identity).
    o_ref[0] = out.astype(o_ref.dtype)


def _gcn_kernel_stream(n_nodes, tk, x_ref, adj_ref, w_ref, b_ref, o_ref, acc_ref):
    """k-tiled reduction for very large N (adj row slab does not fit VMEM).

    x_ref:   (1, n_cols, Fin)   per-batch resident (rows zero-padded to n_cols)
    adj_ref: (1, TM, TK)        streamed tile (adj un-padded; tail masked here)
    w_ref:   (Fin, Fout) f32    resident
    b_ref:   (1, Fout)   f32    resident
    o_ref:   (1, TM, Fout)
    acc_ref: (TM, Fin)   f32    row-tile accumulator for (adj @ x)
    """
    k = pl.program_id(2)

    @pl.when(k == 0)
    def _():
        acc_ref[...] = jnp.zeros_like(acc_ref)

    adj_blk = adj_ref[0]
    if n_nodes % tk != 0:
        # The last k tile sticks past N: zero the out-of-range adjacency
        # columns (the un-copied part of the block holds stale VMEM).
        col = jax.lax.broadcasted_iota(jnp.int32, adj_blk.shape, 1)
        adj_blk = jnp.where(col + k * tk < n_nodes, adj_blk, 0)

    start = pl.multiple_of(k * tk, tk)
    xk = x_ref[0, pl.ds(start, tk), :]
    acc_ref[...] += jnp.dot(adj_blk, xk, preferred_element_type=jnp.float32)

    @pl.when(k == pl.num_programs(2) - 1)
    def _():
        out = jnp.dot(acc_ref[...], w_ref[...], preferred_element_type=jnp.float32)
        out = out + b_ref[...]
        out = jnp.where(out >= 0, out, 0.2 * out)        # LeakyReLU(0.2)
        # TODO(synk): Dropout(p=0.1) omitted (eval-mode identity).
        o_ref[0] = out.astype(o_ref.dtype)


# --------------------------------- wrapper -----------------------------------

def graph_convolution(x, adj, weight, bias=None, *,
                      out_dtype=None,
                      vmem_budget_bytes=40 * 1024 * 1024,
                      row_tile_cap=1024,
                      k_tile=2048):
    """Pallas GCN layer: LeakyReLU_0.2(adj @ (x @ W) + b); dropout = identity.

    x: (B, N, Fin), adj: (B, N, N), weight: (Fin, Fout), bias: (Fout,) | None.
    Returns (B, N, Fout) in `out_dtype` (defaults to x.dtype).
    """
    B, N, Fin = x.shape
    assert adj.shape == (B, N, N), adj.shape
    Fin_w, Fout = weight.shape
    assert Fin_w == Fin
    if out_dtype is None:
        out_dtype = x.dtype

    # Tiny parameters: keep them in f32 so the epilogue projection is exact.
    w32 = weight.astype(jnp.float32)
    b32 = (jnp.zeros((1, Fout), jnp.float32) if bias is None
           else bias.astype(jnp.float32).reshape(1, Fout))

    adj_item = adj.dtype.itemsize
    x_item = x.dtype.itemsize
    out_item = jnp.dtype(out_dtype).itemsize

    flops = 2 * B * N * N * Fin + 2 * B * N * Fin * Fout
    bytes_accessed = (B * N * N * adj_item + B * N * Fin * x_item
                      + Fin * Fout * 4 + Fout * 4 + B * N * Fout * out_item)
    cost = pl.CostEstimate(flops=int(flops), transcendentals=0,
                           bytes_accessed=int(bytes_accessed))

    # Resident parameter buffers (Pallas double-buffers every input).
    params_bytes = 2 * (_vmem_block_bytes((Fin, Fout), 4)
                        + _vmem_block_bytes((1, Fout), 4))

    # ---------------- collapsed-reduction path (typical graph sizes) --------
    x_slab_bytes = 2 * _vmem_block_bytes((N, Fin), x_item)
    per_row_bytes = 2 * (_round_up(N, _LANE) * adj_item        # adj row (x2 bufs)
                         + _round_up(Fout, _LANE) * out_item)  # out row (x2 bufs)
    tm_budget = (vmem_budget_bytes - x_slab_bytes - params_bytes) // per_row_bytes

    if tm_budget >= min(N, 128):
        if N <= min(row_tile_cap, tm_budget):
            tm = N
        else:
            tm = min(row_tile_cap, tm_budget // 8 * 8)
        if B == 1 and tm >= N and N >= 16:
            # Give megacore (v7x: 2 TCs) at least two parallel row tiles.
            tm = _round_up((N + 1) // 2, 8)
        grid = (B, pl.cdiv(N, tm))

        vmem_needed = x_slab_bytes + params_bytes + tm * per_row_bytes
        vmem_limit = int(min(max(vmem_needed * 5 // 4 + (1 << 20), 8 << 20),
                             48 << 20))

        return pl.pallas_call(
            _gcn_kernel_fused,
            out_shape=jax.ShapeDtypeStruct((B, N, Fout), out_dtype),
            grid_spec=pltpu.PrefetchScalarGridSpec(
                num_scalar_prefetch=0,
                grid=grid,
                in_specs=[
                    pl.BlockSpec((1, N, Fin), lambda b, i: (b, 0, 0)),   # x resident
                    pl.BlockSpec((1, tm, N), lambda b, i: (b, i, 0)),    # adj stream
                    pl.BlockSpec((Fin, Fout), lambda b, i: (0, 0)),      # W resident
                    pl.BlockSpec((1, Fout), lambda b, i: (0, 0)),        # bias resident
                ],
                out_specs=pl.BlockSpec((1, tm, Fout), lambda b, i: (b, i, 0)),
            ),
            compiler_params=pltpu.CompilerParams(
                dimension_semantics=("parallel", "parallel"),
                vmem_limit_bytes=vmem_limit),
            cost_estimate=cost,
        )(x, adj, w32, b32)

    # ---------------- streaming (k-tiled) path for very large N -------------
    tk = _round_up(min(k_tile, _round_up(N, _LANE)), _LANE)
    n_cols = _round_up(N, tk)
    x_slab_bytes = 2 * _vmem_block_bytes((n_cols, Fin), x_item)
    per_row_bytes = (2 * (tk * adj_item + _round_up(Fout, _LANE) * out_item)
                     + _round_up(Fin, _LANE) * 4)              # + acc scratch row
    tm_budget = (vmem_budget_bytes - x_slab_bytes - params_bytes) // per_row_bytes
    tm = max(8, min(row_tile_cap, tm_budget // 8 * 8, _round_up(N, 8)))
    grid = (B, pl.cdiv(N, tm), n_cols // tk)

    # x is tiny: zero-pad its rows so the in-kernel dynamic slice stays in
    # bounds.  adj itself is neither cast nor padded.
    xp = jnp.pad(x, ((0, 0), (0, n_cols - N), (0, 0))) if n_cols != N else x

    vmem_needed = x_slab_bytes + params_bytes + tm * per_row_bytes
    vmem_limit = int(min(max(vmem_needed * 5 // 4 + (1 << 20), 8 << 20), 48 << 20))

    return pl.pallas_call(
        functools.partial(_gcn_kernel_stream, N, tk),
        out_shape=jax.ShapeDtypeStruct((B, N, Fout), out_dtype),
        grid_spec=pltpu.PrefetchScalarGridSpec(
            num_scalar_prefetch=0,
            grid=grid,
            in_specs=[
                pl.BlockSpec((1, n_cols, Fin), lambda b, i, k: (b, 0, 0)),  # x resident
                pl.BlockSpec((1, tm, tk), lambda b, i, k: (b, i, k)),       # adj stream
                pl.BlockSpec((Fin, Fout), lambda b, i, k: (0, 0)),
                pl.BlockSpec((1, Fout), lambda b, i, k: (0, 0)),
            ],
            out_specs=pl.BlockSpec((1, tm, Fout), lambda b, i, k: (b, i, 0)),
            scratch_shapes=[pltpu.VMEM((tm, Fin), jnp.float32)],
        ),
        compiler_params=pltpu.CompilerParams(
            dimension_semantics=("parallel", "parallel", "arbitrary"),
            vmem_limit_bytes=vmem_limit),
        cost_estimate=cost,
    )(xp, adj, w32, b32)


# --------------------------------- test --------------------------------------

def _reference(x, adj, weight, bias):
    support = jnp.matmul(x, weight)
    out = jnp.matmul(adj, support)
    if bias is not None:
        out = out + bias
    return jnp.where(out >= 0, out, 0.2 * out)   # dropout: identity (eval mode)


if __name__ == "__main__":
    key = jax.random.PRNGKey(0)

    def make_case(k, B, N, Fin, Fout, with_bias):
        k_x, k_adj, k_w, k_b = jax.random.split(k, 4)
        x = jax.random.normal(k_x, (B, N, Fin), dtype=jnp.float32)
        a = jax.random.uniform(k_adj, (B, N, N), dtype=jnp.float32)
        adj = (a + jnp.transpose(a, (0, 2, 1))) * 0.5          # symmetric adjacency-like
        stdv = 1.0 / math.sqrt(Fout)
        weight = jax.random.uniform(k_w, (Fin, Fout), minval=-stdv, maxval=stdv,
                                    dtype=jnp.float32)
        bias = (jax.random.uniform(k_b, (Fout,), minval=-stdv, maxval=stdv,
                                   dtype=jnp.float32) if with_bias else None)
        return x, adj, weight, bias

    def check(out, ref, name):
        out = jax.block_until_ready(out)
        assert out.shape == ref.shape, (name, out.shape, ref.shape)
        assert jnp.allclose(out, ref, atol=1e-3, rtol=1e-3), f"{name}: mismatch vs reference"

    k1, k2 = jax.random.split(key)

    # Case 1: module-typical small shapes -> collapsed (single-contraction) path.
    x, adj, w, b = make_case(k1, B=2, N=256, Fin=16, Fout=32, with_bias=True)
    ref = _reference(x, adj, w, b)
    check(graph_convolution(x, adj, w, b), ref, "collapsed")

    # Same inputs forced through the streaming (k-tiled) fallback path.
    check(graph_convolution(x, adj, w, b, vmem_budget_bytes=512 * 1024,
                            k_tile=128), ref, "streaming")

    # Case 2: ragged sizes (N, Fin not 8/128 multiples), no bias, B=1.
    x2, adj2, w2, b2 = make_case(k2, B=1, N=200, Fin=12, Fout=32, with_bias=False)
    ref2 = _reference(x2, adj2, w2, b2)
    check(graph_convolution(x2, adj2, w2, b2), ref2, "collapsed-ragged")
    check(graph_convolution(x2, adj2, w2, b2, vmem_budget_bytes=512 * 1024,
                            k_tile=128), ref2, "streaming-ragged")

    print("KERNEL_OK")
</pallas_src>

<mosaic_0001>
module attributes {stable_mosaic.version = 11 : i64} {
  func.func @_gcn_kernel_fused(%arg0: i32, %arg1: i32, %arg2: memref<1x256x16xf32, #tpu.memory_space<vmem>>, %arg3: memref<1x256x256xf32, #tpu.memory_space<vmem>>, %arg4: memref<16x32xf32, #tpu.memory_space<vmem>>, %arg5: memref<1x32xf32, #tpu.memory_space<vmem>>, %arg6: memref<1x256x32xf32, #tpu.memory_space<vmem>>) attributes {dimension_semantics = [#tpu.dimension_semantics<parallel>, #tpu.dimension_semantics<parallel>], iteration_bounds = array<i64: 2, 1>, scalar_prefetch = 0 : i64, scratch_operands = 0 : i64, tpu.core_type = #tpu.core_type<tc>, window_params = [{transform_indices = @transform_0, window_bounds = array<i64: 1, 256, 16>}, {transform_indices = @transform_1, window_bounds = array<i64: 1, 256, 256>}, {pipeline_mode = #tpu.pipeline_mode<synchronous>, transform_indices = @transform_2, window_bounds = array<i64: 16, 32>}, {pipeline_mode = #tpu.pipeline_mode<synchronous>, transform_indices = @transform_3, window_bounds = array<i64: 1, 32>}, {transform_indices = @transform_4, window_bounds = array<i64: 1, 256, 32>}]} {
    %c0 = arith.constant 0 : index
    %c0_0 = arith.constant 0 : index
    %c0_1 = arith.constant 0 : index
    %0 = vector.load %arg3[%c0, %c0_0, %c0_1] : memref<1x256x256xf32, #tpu.memory_space<vmem>>, vector<1x256x256xf32>
    %1 = vector.shape_cast %0 : vector<1x256x256xf32> to vector<256x256xf32>
    %c0_2 = arith.constant 0 : index
    %c0_3 = arith.constant 0 : index
    %c0_4 = arith.constant 0 : index
    %2 = vector.load %arg2[%c0_2, %c0_3, %c0_4] : memref<1x256x16xf32, #tpu.memory_space<vmem>>, vector<1x256x16xf32>
    %3 = vector.shape_cast %2 : vector<1x256x16xf32> to vector<256x16xf32>
    %cst = arith.constant dense<0.000000e+00> : vector<256x16xf32>
    %4 = tpu.matmul %1, %3, %cst {dimension_numbers = #tpu.dot_dimension_numbers<[1], [0], [0], [1], [0, 0, 1, 1], [], []>} : vector<256x256xf32>, vector<256x16xf32>, vector<256x16xf32> -> vector<256x16xf32>
    %c0_5 = arith.constant 0 : index
    %c0_6 = arith.constant 0 : index
    %5 = vector.load %arg4[%c0_5, %c0_6] : memref<16x32xf32, #tpu.memory_space<vmem>>, vector<16x32xf32>
    %cst_7 = arith.constant dense<0.000000e+00> : vector<256x32xf32>
    %6 = tpu.matmul %4, %5, %cst_7 {dimension_numbers = #tpu.dot_dimension_numbers<[1], [0], [0], [1], [0, 0, 1, 1], [], []>} : vector<256x16xf32>, vector<16x32xf32>, vector<256x32xf32> -> vector<256x32xf32>
    %c0_8 = arith.constant 0 : index
    %c0_9 = arith.constant 0 : index
    %7 = vector.load %arg5[%c0_8, %c0_9] : memref<1x32xf32, #tpu.memory_space<vmem>>, vector<1x32xf32>
    %8 = vector.broadcast %7 : vector<1x32xf32> to vector<256x32xf32>
    %9 = arith.addf %6, %8 : vector<256x32xf32>
    %cst_10 = arith.constant 0.000000e+00 : f32
    %10 = vector.broadcast %cst_10 : f32 to vector<256x32xf32>
    %11 = arith.cmpf oge, %9, %10 : vector<256x32xf32>
    %cst_11 = arith.constant 2.000000e-01 : f32
    %12 = vector.broadcast %cst_11 : f32 to vector<256x32xf32>
    %13 = arith.mulf %12, %9 : vector<256x32xf32>
    %14 = arith.select %11, %9, %13 : vector<256x32xi1>, vector<256x32xf32>
    %c0_12 = arith.constant 0 : index
    %c0_13 = arith.constant 0 : index
    %c0_14 = arith.constant 0 : index
    %15 = vector.load %arg6[%c0_12, %c0_13, %c0_14] : memref<1x256x32xf32, #tpu.memory_space<vmem>>, vector<1x256x32xf32>
    %16 = vector.shape_cast %15 : vector<1x256x32xf32> to vector<256x32xf32>
    %17 = vector.shape_cast %14 : vector<256x32xf32> to vector<1x256x32xf32>
    tpu.vector_store %arg6[%c0_12, %c0_13, %c0_14], %17 {strides = array<i32>} : memref<1x256x32xf32, #tpu.memory_space<vmem>>, vector<1x256x32xf32>,
    return
  }
  func.func @transform_0(%arg0: i32, %arg1: i32) -> (i32, i32, i32) {
    %c0_i32 = arith.constant 0 : i32
    %c0_i32_0 = arith.constant 0 : i32
    %c0_i32_1 = arith.constant 0 : i32
    return %arg0, %c0_i32, %c0_i32_0 : i32, i32, i32
  }
  func.func @transform_1(%arg0: i32, %arg1: i32) -> (i32, i32, i32) {
    %c0_i32 = arith.constant 0 : i32
    %c0_i32_0 = arith.constant 0 : i32
    return %arg0, %arg1, %c0_i32 : i32, i32, i32
  }
  func.func @transform_2(%arg0: i32, %arg1: i32) -> (i32, i32) {
    %c0_i32 = arith.constant 0 : i32
    %c0_i32_0 = arith.constant 0 : i32
    %c0_i32_1 = arith.constant 0 : i32
    return %c0_i32, %c0_i32_0 : i32, i32
  }
  func.func @transform_3(%arg0: i32, %arg1: i32) -> (i32, i32) {
    %c0_i32 = arith.constant 0 : i32
    %c0_i32_0 = arith.constant 0 : i32
    %c0_i32_1 = arith.constant 0 : i32
    return %c0_i32, %c0_i32_0 : i32, i32
  }
  func.func @transform_4(%arg0: i32, %arg1: i32) -> (i32, i32, i32) {
    %c0_i32 = arith.constant 0 : i32
    %c0_i32_0 = arith.constant 0 : i32
    return %arg0, %arg1, %c0_i32 : i32, i32, i32
  }
}

</mosaic_0001>

<bundles_post_ra>
// kernel: tpu_custom_call.1
= control target key start
LH: loop header
LB: loop body
LE: loop exit
PB: predicated region body
PF: predicated region fallthrough
CT: control target
= control target key end

     0   :  { %9 = vsyncpa [#allocation3], 0  ;;  %s1970_s0 = inlined_call_operand.vmem [shape: f32[2,256,16], index: 0, kind: input, shape index: {}]   ;;  %s1971_s1 = inlined_call_operand.hbm [shape: f32[2,256,256], index: 1, kind: input, shape index: {}]   ;;  %s1972_s2 = inlined_call_operand.vmem [shape: f32[16,32], index: 2, kind: input, shape index: {}]   ;;  %s1973_s3 = inlined_call_operand.vmem [shape: f32[1,32], index: 3, kind: input, shape index: {}]   ;;  %s1974_s4 = inlined_call_operand.vmem [shape: f32[2,256,32], index: 4, kind: output, shape index: {}]  }
   0x1   :  { %11 = vsyncpa [#allocation3 + $0x1], 0  ;;  %s1545_s15 = smov 0   ;;  %s1547_s16 = smov 0  }
   0x2   :  { %s1549_s17 = smov 0   ;;  %s1551_s18 = smov 0  }
   0x3   :  { %s1553_s19 = smov 0   ;;  %s1555_s20 = smov 0  }
   0x4 LB: > { %s1155_s21 = sadd.s32 4294967295, %s1514_s20   ;;  %s29_s22 = sadd.s32 1, %s1510_s19  ;;  %s1514_s20 = sphi %s1555_s20, %s17_s20   ;;  %s1510_s19 = sphi %s1553_s19, %s1982_s19   ;;  %s1506_s18 = sphi %s1551_s18, %s1981_s18   ;;  %s1502_s17 = sphi %s1549_s17, %s1980_s17   ;;  %s1498_s16 = sphi %s1547_s16, %s1979_s16   ;;  %s1494_s15 = sphi %s1545_s15, %s1978_s15  }
   0x5   : > { %p31_p0 = scmp.ge.s32.totalorder %s29_s22, 2  ;;  %s64_s23 = sadd.s32 1, %s1502_s17 }
   0x6   : > { %p71_p1 = scmp.ne.s32.totalorder %s1502_s17, %s1498_s16  ;;  %p72_p2 = scmp.eq.s32.totalorder %s1514_s20, 0 }
   0x7   : > { %s1984_s22 = smov (%p31_p0, %s29_s22), 0  ;;  %p77_p4 = scmp.ne.s32.totalorder %s1498_s16, %s1494_s15 }
   0x8   : > { %p1581_p3 = por %p72_p2, %p71_p1  ;;  %s59_s25 = ssub.s32 %s1510_s19, %s1984_s22 }
   0x9   : > { %p78_p5 = scmp.eq.s32.totalorder %s1155_s21, 0  ;;  %p62_p6 = scmp.eq.s32.totalorder %s59_s25, 0 }
   0xa   : > { %p1382_p8 = scmp.lt.s32.totalorder %s1514_s20, 2  ;;  %s185_s28 = sand.u32 1, %s1502_s17  }
   0xb   : > { %p1588_p7 = por %p78_p5, %p77_p4  ;;  %s1203_s29 = sshll.u32 %s1510_s19, 13 }
   0xc   : > { %s1594_s27 = scalar_select %p62_p6, %s1502_s17, %s64_s23  }
   0xd   : > { %s1159_s30 = sshll.u32 %s185_s28, 9  ;;  %s1601_s7 = scalar_lea.hbm %s1971_s1, %s1203_s29 }
   0xe   : > { %s189_s8 = scalar_lea.vmem [#allocation2], %s1159_s30  ;;  %p1605_p9 = pnand %p1382_p8, %p1581_p3 }
   0xf   : > { %s199_s9 = sshll.u32 %s189_s8, 4  ;;  %s1611_s11 = scalar_lea.sflag [#allocation3], %s185_s28  ;;  %s1609_s9 = int_to_ptr.vmem [resolvable:$true] %s199_s9 }
  0x10   : > { %s1434_s12 = scalar_lea.hbm %s1601_s7, 8192  ;;  %p1436_p11 = pneg %p1605_p9 }
  0x11   : > { %p1435_p10 = scmp.ne.s32.totalorder %s1601_s7, %s1434_s12  ;;  %s1439_s15 = scalar_lea.hbm %s1971_s1, 16384 }
  0x12   : > { %p1440_p0 = scmp.lt.u32.totalorder %s1601_s7, %s1971_s1  ;;  %p1441_p1 = scmp.lt.u32.totalorder %s1439_s15, %s1434_s12 }
  0x13   : > { %p1437_p12 = pnand %p1436_p11, %p1435_p10  ;;  %p1443_p3 = scmp.lt.u32.totalorder %s1434_s12, %s1601_s7 }
  0x14   : > { %p1442_p2 = por %p1441_p1, %p1440_p0 }
  0x15   : > { %p1438_p13 = pneg %p1437_p12 }
  0x16   : > { %p1444_p4 = por %p1443_p3, %p1442_p2 }
  0x18   : > { %p1445_p5 = pnand %p1444_p4, %p1438_p13 }
  0x1a   : > { %1448 = shalt.err (!%p1445_p5)
}
  0x1b   : > { %s1449_s24 = scalar_lea.vmem %s1609_s9, 8192  ;;  %s1516_s25 = smov [#allocation2]  }
  0x1c   : > { %p1450_p6 = scmp.ne.s32.totalorder %s1609_s9, %s1449_s24  ;;  %s1454_s28 = sshll.u32 %s1516_s25, 4  ;;  %s1455_s28 = int_to_ptr.vmem [resolvable:$false] %s1454_s28 }
  0x1d   : > { %s1456_s29 = scalar_lea.vmem %s1455_s28, 16384  ;;  %p1457_p12 = scmp.lt.s32.totalorder %s1609_s9, %s1455_s28 }
  0x1e   : > { %p1452_p8 = pnand %p1450_p6, %p1436_p11  ;;  %p1458_p0 = scmp.lt.s32.totalorder %s1456_s29, %s1449_s24 }
  0x20   : > { %p1453_p10 = pneg %p1452_p8  ;;  %p1459_p1 = por %p1458_p0, %p1457_p12 }
  0x22   : > { %p1460_p2 = pnand %p1459_p1, %p1453_p10 }
  0x24   : > { %1463 = shalt.err (!%p1460_p2)
}
  0x25   : > { %s1517_s30 = smov 256   ;;  %s1518_s5 = smov 16  }
  0x26   : > { %1381 = dma.hbm_to_vmem [thread:$0]  (!%p1605_p9), %s1601_s7, 8192, %s1609_s9, %s1611_s11, %s1517_s30, %s1517_s30, %s1518_s5  }
  0x27   : > { %p1162_p11 = scmp.ge.s32.totalorder %s1514_s20, 1  ;;  %p207_p13 = scmp.lt.s32.totalorder %s1514_s20, 3 }
  0x29   : > { %p208_p3 = pnand %p1162_p11, %p207_p13 }
  0x2a   : > { %s213_s6 = sand.u32 (!%p208_p3), 1, %s1498_s16  }
  0x2b   : > { %211 = sbr.rel (%p208_p3) target bundleno = 661 (0x295), region = 36  ;;  %s1163_s8 = sshll.u32 (!%p208_p3), %s213_s6, 9 }
  0x2c   : > { %s214_s12 = scalar_lea.sflag (!%p208_p3), [#allocation3], %s213_s6  ;;  %s1642_s13 = scalar_lea.vmem (!%p208_p3), [#allocation2], %s1163_s8 }
  0x32   : > { %1489 = dma.done.wait (%p1588_p7), %s214_s12, 8192  }
  0x33   : > { %1491 = vsyncadd (%p1588_p7), %s214_s12, 4294959104  ;;  %p251_p4 = scmp.lt.s32.totalorder %s1506_s18, 1  ;;  %v1519_v0 = vmov 0.0|0.0   ;;  %v268_v12 = vld [vmem:[%s1642_s13 + $0x8] sm:$0xff]  ;;  %v267_v51 = vld [vmem:[%s1642_s13] sm:$0xff]  ;;  %vm597_vm0 = vcmask 130048  }
  0x34   : > { %1292 = vmatprep.subr.bf16.mxu0 %v1519_v0  ;;  %1344 = vmatprep.subr.bf16.mxu1 %v1519_v0  ;;  %v316_v25 = vld [vmem:[%s1642_s13 + $0x188] sm:$0xff]  ;;  %v270_v52 = vld [vmem:[%s1642_s13 + $0x18] sm:$0xff]  ;;  %v315_v53 = vld [vmem:[%s1642_s13 + $0x180] sm:$0xff]  ;;  %vm1015_vm2 = vcmask 261120  }
  0x35   : > { %s1986_s18 = smov (!%p251_p4, %s1506_s18), 1  ;;  %427 = vmatprep.mubr.f32.mxu0 %v268_v12  ;;  %547 = vmatprep.mubr.f32.mxu1 %v316_v25  ;;  %v318_v54 = vld [vmem:[%s1642_s13 + $0x198] sm:$0xff]  ;;  %v269_v55 = vld [vmem:[%s1642_s13 + $0x10] sm:$0xff]  ;;  %v272_v56 = vld [vmem:[%s1642_s13 + $0x28] sm:$0xff] }
  0x36   : > { %s1204_s7 = sshll.u32 %s1986_s18, 8  ;;  %v317_v57 = vld [vmem:[%s1642_s13 + $0x190] sm:$0xff]  ;;  %v320_v58 = vld [vmem:[%s1642_s13 + $0x1a8] sm:$0xff]  ;;  %v271_v59 = vld [vmem:[%s1642_s13 + $0x20] sm:$0xff] }
  0x37   : > { %s1660_s11 = scalar_lea.vmem %s1970_s0, %s1204_s7  ;;  %v274_v60 = vld [vmem:[%s1642_s13 + $0x38] sm:$0xff]  ;;  %v319_v61 = vld [vmem:[%s1642_s13 + $0x1a0] sm:$0xff]  ;;  %v273_v63 = vld [vmem:[%s1642_s13 + $0x30] sm:$0xff]  ;;  %s1856_s29 = scalar_lea.vmem %s1974_s4, %s1204_s7 }
  0x38   : > { %v331_v1 = vld [vmem:[%s1660_s11] sm:$0xff]  ;;  %v332_v2 = vld [vmem:[%s1660_s11 + $0x8] sm:$0xff]  ;;  %v333_v3 = vld [vmem:[%s1660_s11 + $0x10] sm:$0xff] }
  0x39   : > { %v1293_v4 = vpack.c.bf16 %v332_v2, %v331_v1  ;;  %v334_v5 = vld [vmem:[%s1660_s11 + $0x18] sm:$0xff]  ;;  %v335_v7 = vld [vmem:[%s1660_s11 + $0x20] sm:$0xff]  ;;  %v336_v8 = vld [vmem:[%s1660_s11 + $0x28] sm:$0xff] }
  0x3a   : > { %v1296_v6 = vpack.c.bf16 %v334_v5, %v333_v3  ;;  %v1299_v9 = vpack.c.bf16 %v336_v8, %v335_v7  ;;  %v337_v10 = vld [vmem:[%s1660_s11 + $0x30] sm:$0xff]  ;;  %v338_v11 = vld [vmem:[%s1660_s11 + $0x38] sm:$0xff]  ;;  %v339_v14 = vld [vmem:[%s1660_s11 + $0x40] sm:$0xff] }
  0x3b   : > { %1294 = vmatpush1.bf16.msra.mxu0 %v1293_v4  ;;  %1360 = vmatpush1.bf16.msra.mxu1 %v1293_v4  ;;  %v1302_v13 = vpack.c.bf16 %v338_v11, %v337_v10  ;;  %v340_v15 = vld [vmem:[%s1660_s11 + $0x48] sm:$0xff]  ;;  %v341_v17 = vld [vmem:[%s1660_s11 + $0x50] sm:$0xff]  ;;  %v342_v18 = vld [vmem:[%s1660_s11 + $0x58] sm:$0xff] }
  0x3c   : > { %1295 = vmatprep.subr.bf16.mxu0 %v1519_v0  ;;  %1345 = vmatprep.subr.bf16.mxu1 %v1519_v0  ;;  %v1305_v16 = vpack.c.bf16 %v340_v15, %v339_v14  ;;  %v1308_v19 = vpack.c.bf16 %v342_v18, %v341_v17  ;;  %v343_v20 = vld [vmem:[%s1660_s11 + $0x60] sm:$0xff]  ;;  %v344_v21 = vld [vmem:[%s1660_s11 + $0x68] sm:$0xff]  ;;  %v345_v23 = vld [vmem:[%s1660_s11 + $0x70] sm:$0xff] }
  0x3d   : > { %v1311_v22 = vpack.c.bf16 %v344_v21, %v343_v20  ;;  %v346_v24 = vld [vmem:[%s1660_s11 + $0x78] sm:$0xff]  ;;  %v347_v27 = vld [vmem:[%s1660_s11 + $0x80] sm:$0xff]  ;;  %v348_v28 = vld [vmem:[%s1660_s11 + $0x88] sm:$0xff] }
  0x3e   : > { %v1314_v26 = vpack.c.bf16 %v346_v24, %v345_v23  ;;  %v1317_v29 = vpack.c.bf16 %v348_v28, %v347_v27  ;;  %v349_v30 = vld [vmem:[%s1660_s11 + $0x90] sm:$0xff]  ;;  %v350_v31 = vld [vmem:[%s1660_s11 + $0x98] sm:$0xff]  ;;  %v351_v33 = vld [vmem:[%s1660_s11 + $0xa0] sm:$0xff] }
  0x3f   : > { %1297 = vmatpush1.bf16.msra.mxu0 %v1296_v6  ;;  %1361 = vmatpush1.bf16.msra.mxu1 %v1296_v6  ;;  %v1320_v32 = vpack.c.bf16 %v350_v31, %v349_v30  ;;  %v352_v34 = vld [vmem:[%s1660_s11 + $0xa8] sm:$0xff]  ;;  %v353_v36 = vld [vmem:[%s1660_s11 + $0xb0] sm:$0xff]  ;;  %v354_v37 = vld [vmem:[%s1660_s11 + $0xb8] sm:$0xff] }
  0x40   : > { %1298 = vmatprep.subr.bf16.mxu0 %v1519_v0  ;;  %1346 = vmatprep.subr.bf16.mxu1 %v1519_v0  ;;  %v1323_v35 = vpack.c.bf16 %v352_v34, %v351_v33  ;;  %v1326_v38 = vpack.c.bf16 %v354_v37, %v353_v36  ;;  %v355_v39 = vld [vmem:[%s1660_s11 + $0xc0] sm:$0xff]  ;;  %v356_v40 = vld [vmem:[%s1660_s11 + $0xc8] sm:$0xff]  ;;  %v357_v42 = vld [vmem:[%s1660_s11 + $0xd0] sm:$0xff] }
  0x41   : > { %v1329_v41 = vpack.c.bf16 %v356_v40, %v355_v39  ;;  %v358_v43 = vld [vmem:[%s1660_s11 + $0xd8] sm:$0xff]  ;;  %v359_v45 = vld [vmem:[%s1660_s11 + $0xe0] sm:$0xff]  ;;  %v360_v46 = vld [vmem:[%s1660_s11 + $0xe8] sm:$0xff] }
  0x42   : > { %v1332_v44 = vpack.c.bf16 %v358_v43, %v357_v42  ;;  %v1335_v47 = vpack.c.bf16 %v360_v46, %v359_v45  ;;  %v361_v48 = vld [vmem:[%s1660_s11 + $0xf0] sm:$0xff]  ;;  %v362_v49 = vld [vmem:[%s1660_s11 + $0xf8] sm:$0xff]  ;;  %v324_v2 = vld [vmem:[%s1642_s13 + $0x1c8] sm:$0xff] }
  0x43   : > { %1300 = vmatpush1.bf16.msra.mxu0 %v1299_v9  ;;  %1362 = vmatpush1.bf16.msra.mxu1 %v1299_v9  ;;  %v1338_v50 = vpack.c.bf16 %v362_v49, %v361_v48  ;;  %v322_v62 = vld [vmem:[%s1642_s13 + $0x1b8] sm:$0xff]  ;;  %v321_v1 = vld [vmem:[%s1642_s13 + $0x1b0] sm:$0xff]  ;;  %v275_v3 = vld [vmem:[%s1642_s13 + $0x40] sm:$0xff] }
  0x44   : > { %1301 = vmatprep.subr.bf16.mxu0 %v1519_v0  ;;  %1347 = vmatprep.subr.bf16.mxu1 %v1519_v0  ;;  %v278_v4 = vld [vmem:[%s1642_s13 + $0x58] sm:$0xff]  ;;  %v323_v5 = vld [vmem:[%s1642_s13 + $0x1c0] sm:$0xff]  ;;  %v277_v7 = vld [vmem:[%s1642_s13 + $0x50] sm:$0xff] }
  0x45   : > { %v326_v6 = vld [vmem:[%s1642_s13 + $0x1d8] sm:$0xff]  ;;  %v280_v8 = vld [vmem:[%s1642_s13 + $0x68] sm:$0xff]  ;;  %v325_v9 = vld [vmem:[%s1642_s13 + $0x1d0] sm:$0xff] }
  0x46   : > { %v328_v10 = vld [vmem:[%s1642_s13 + $0x1e8] sm:$0xff]  ;;  %v279_v11 = vld [vmem:[%s1642_s13 + $0x60] sm:$0xff]  ;;  %v282_v12 = vld [vmem:[%s1642_s13 + $0x78] sm:$0xff] }
  0x47   : > { %1303 = vmatpush1.bf16.msra.mxu0 %v1302_v13  ;;  %1363 = vmatpush1.bf16.msra.mxu1 %v1302_v13  ;;  %v327_v13 = vld [vmem:[%s1642_s13 + $0x1e0] sm:$0xff]  ;;  %v330_v14 = vld [vmem:[%s1642_s13 + $0x1f8] sm:$0xff]  ;;  %v281_v15 = vld [vmem:[%s1642_s13 + $0x70] sm:$0xff] }
  0x48   : > { %1304 = vmatprep.subr.bf16.mxu0 %v1519_v0  ;;  %1348 = vmatprep.subr.bf16.mxu1 %v1519_v0  ;;  %v329_v17 = vld [vmem:[%s1642_s13 + $0x1f0] sm:$0xff]  ;;  %v283_v18 = vld [vmem:[%s1642_s13 + $0x80] sm:$0xff]  ;;  %v288_v21 = vld [vmem:[%s1642_s13 + $0xa8] sm:$0xff] }
  0x49   : > { %v285_v20 = vld [vmem:[%s1642_s13 + $0x90] sm:$0xff]  ;;  %v290_v23 = vld [vmem:[%s1642_s13 + $0xb8] sm:$0xff]  ;;  %v292_v25 = vld [vmem:[%s1642_s13 + $0xc8] sm:$0xff] }
  0x4a   : > { %v289_v24 = vld [vmem:[%s1642_s13 + $0xb0] sm:$0xff]  ;;  %v294_v27 = vld [vmem:[%s1642_s13 + $0xd8] sm:$0xff]  ;;  %v295_v30 = vld [vmem:[%s1642_s13 + $0xe0] sm:$0xff] }
  0x4b   : > { %1306 = vmatpush1.bf16.msra.mxu0 %v1305_v16  ;;  %1364 = vmatpush1.bf16.msra.mxu1 %v1305_v16  ;;  %v284_v16 = vld [vmem:[%s1642_s13 + $0x88] sm:$0xff]  ;;  %v293_v28 = vld [vmem:[%s1642_s13 + $0xd0] sm:$0xff]  ;;  %v298_v31 = vld [vmem:[%s1642_s13 + $0xf8] sm:$0xff] }
  0x4c   : > { %1307 = vmatprep.subr.bf16.mxu0 %v1519_v0  ;;  %1349 = vmatprep.subr.bf16.mxu1 %v1519_v0  ;;  %v300_v33 = vld [vmem:[%s1642_s13 + $0x108] sm:$0xff]  ;;  %v299_v34 = vld [vmem:[%s1642_s13 + $0x100] sm:$0xff]  ;;  %v301_v36 = vld [vmem:[%s1642_s13 + $0x110] sm:$0xff] }
  0x4d   : > { %v304_v37 = vld [vmem:[%s1642_s13 + $0x128] sm:$0xff]  ;;  %v306_v39 = vld [vmem:[%s1642_s13 + $0x138] sm:$0xff]  ;;  %v305_v40 = vld [vmem:[%s1642_s13 + $0x130] sm:$0xff] }
  0x4e   : > { %v307_v42 = vld [vmem:[%s1642_s13 + $0x140] sm:$0xff]  ;;  %v310_v43 = vld [vmem:[%s1642_s13 + $0x158] sm:$0xff]  ;;  %v589_v46 = vld [vmem:[%s1972_s2 + $0x8] sm:$0xff] }
  0x4f   : > { %1309 = vmatpush1.bf16.msra.mxu0 %v1308_v19  ;;  %1365 = vmatpush1.bf16.msra.mxu1 %v1308_v19  ;;  %v286_v19 = vld [vmem:[%s1642_s13 + $0x98] sm:$0xff]  ;;  %v588_v45 = vld [vmem:[%s1972_s2] sm:$0xff] }
  0x50   : > { %1310 = vmatprep.subr.bf16.mxu0 %v1519_v0  ;;  %1350 = vmatprep.subr.bf16.mxu1 %v1519_v0  ;;  %v1340_v48 = vpack.c.bf16 %v589_v46, %v588_v45  ;;  %v311_v49 = vld [vmem:[%s1642_s13 + $0x160] sm:$0xff] }
  0x53   : > { %1312 = vmatpush1.bf16.msra.mxu0 %v1311_v22  ;;  %1366 = vmatpush1.bf16.msra.mxu1 %v1311_v22  ;;  %v287_v22 = vld [vmem:[%s1642_s13 + $0xa0] sm:$0xff] }
  0x54   : > { %1313 = vmatprep.subr.bf16.mxu0 %v1519_v0  ;;  %1351 = vmatprep.subr.bf16.mxu1 %v1519_v0 }
  0x57   : > { %1315 = vmatpush1.bf16.msra.mxu0 %v1314_v26  ;;  %1367 = vmatpush1.bf16.msra.mxu1 %v1314_v26  ;;  %v291_v26 = vld [vmem:[%s1642_s13 + $0xc0] sm:$0xff] }
  0x58   : > { %1316 = vmatprep.subr.bf16.mxu0 %v1519_v0  ;;  %1352 = vmatprep.subr.bf16.mxu1 %v1519_v0 }
  0x5b   : > { %1318 = vmatpush1.bf16.msra.mxu0 %v1317_v29  ;;  %1368 = vmatpush1.bf16.msra.mxu1 %v1317_v29  ;;  %v296_v29 = vld [vmem:[%s1642_s13 + $0xe8] sm:$0xff] }
  0x5c   : > { %1319 = vmatprep.subr.bf16.mxu0 %v1519_v0  ;;  %1353 = vmatprep.subr.bf16.mxu1 %v1519_v0 }
  0x5f   : > { %1321 = vmatpush1.bf16.msra.mxu0 %v1320_v32  ;;  %1369 = vmatpush1.bf16.msra.mxu1 %v1320_v32  ;;  %v297_v32 = vld [vmem:[%s1642_s13 + $0xf0] sm:$0xff] }
  0x60   : > { %1322 = vmatprep.subr.bf16.mxu0 %v1519_v0  ;;  %1354 = vmatprep.subr.bf16.mxu1 %v1519_v0 }
  0x63   : > { %1324 = vmatpush1.bf16.msra.mxu0 %v1323_v35  ;;  %1370 = vmatpush1.bf16.msra.mxu1 %v1323_v35  ;;  %v302_v35 = vld [vmem:[%s1642_s13 + $0x118] sm:$0xff] }
  0x64   : > { %1325 = vmatprep.subr.bf16.mxu0 %v1519_v0  ;;  %1355 = vmatprep.subr.bf16.mxu1 %v1519_v0 }
  0x67   : > { %1327 = vmatpush1.bf16.msra.mxu0 %v1326_v38  ;;  %1371 = vmatpush1.bf16.msra.mxu1 %v1326_v38  ;;  %v303_v38 = vld [vmem:[%s1642_s13 + $0x120] sm:$0xff] }
  0x68   : > { %1328 = vmatprep.subr.bf16.mxu0 %v1519_v0  ;;  %1356 = vmatprep.subr.bf16.mxu1 %v1519_v0 }
  0x6b   : > { %1330 = vmatpush1.bf16.msra.mxu0 %v1329_v41  ;;  %1372 = vmatpush1.bf16.msra.mxu1 %v1329_v41  ;;  %v308_v41 = vld [vmem:[%s1642_s13 + $0x148] sm:$0xff] }
  0x6c   : > { %1331 = vmatprep.subr.bf16.mxu0 %v1519_v0  ;;  %1357 = vmatprep.subr.bf16.mxu1 %v1519_v0 }
  0x6f   : > { %1333 = vmatpush1.bf16.msra.mxu0 %v1332_v44  ;;  %1373 = vmatpush1.bf16.msra.mxu1 %v1332_v44  ;;  %v309_v44 = vld [vmem:[%s1642_s13 + $0x150] sm:$0xff] }
  0x70   : > { %1334 = vmatprep.subr.bf16.mxu0 %v1519_v0  ;;  %1358 = vmatprep.subr.bf16.mxu1 %v1519_v0 }
  0x73   : > { %1336 = vmatpush1.bf16.msra.mxu0 %v1335_v47  ;;  %1374 = vmatpush1.bf16.msra.mxu1 %v1335_v47  ;;  %v312_v47 = vld [vmem:[%s1642_s13 + $0x168] sm:$0xff] }
  0x74   : > { %1337 = vmatprep.subr.bf16.mxu0 %v1519_v0  ;;  %1359 = vmatprep.subr.bf16.mxu1 %v1519_v0  ;;  %v276_v0 = vld [vmem:[%s1642_s13 + $0x48] sm:$0xff] }
  0x77   : > { %1339 = vmatpush1.bf16.msra.mxu0 %v1338_v50  ;;  %1375 = vmatpush1.bf16.msra.mxu1 %v1338_v50  ;;  %v314_v50 = vld [vmem:[%s1642_s13 + $0x178] sm:$0xff] }
  0x78   : > { %1341 = vmatprep.subr.bf16.mxu1 %v1340_v48 }
  0x7a   : > { %428 = vmatmul.mubr.f32.vlgmr.msra.gmra.mrb[0].mxu0 %v267_v51  ;;  %548 = vmatmul.mubr.f32.vlgmr.msra.gmra.mrb[0].mxu1 %v315_v53  ;;  %v313_v51 = vld [vmem:[%s1642_s13 + $0x170] sm:$0xff] }
  0x7b   : > { %432 = vmatprep.mubr.f32.mxu0 %v270_v52  ;;  %552 = vmatprep.mubr.f32.mxu1 %v318_v54 }
  0x7c   : > { %1343 = vmatpush3.bf16.msra.mxu1 %v1340_v48 }
  0x7e   : > { %433 = vmatmul.mubr.f32.gmra.mrb[2].mxu0 %v269_v55  ;;  %553 = vmatmul.mubr.f32.gmra.mrb[2].mxu1 %v317_v57 }
  0x7f   : > { %437 = vmatprep.mubr.f32.mxu0 %v272_v56  ;;  %557 = vmatprep.mubr.f32.mxu1 %v320_v58 }
  0x82   : > { %438 = vmatmul.mubr.f32.gmra.mrb[4].mxu0 %v271_v59  ;;  %558 = vmatmul.mubr.f32.gmra.mrb[4].mxu1 %v319_v61 }
  0x83   : > { %442 = vmatprep.mubr.f32.mxu0 %v274_v60  ;;  %562 = vmatprep.mubr.f32.mxu1 %v322_v62 }
  0x86   : > { %443 = vmatmul.mubr.f32.gmra.mrb[6].mxu0 %v273_v63  ;;  %563 = vmatmul.mubr.f32.gmra.mrb[6].mxu1 %v321_v1 }
  0x87   : > { %447 = vmatprep.mubr.f32.mxu0 %v276_v0  ;;  %567 = vmatprep.mubr.f32.mxu1 %v324_v2 }
  0x8a   : > { %448 = vmatmul.mubr.f32.gmra.mrb[8].mxu0 %v275_v3  ;;  %568 = vmatmul.mubr.f32.gmra.mrb[8].mxu1 %v323_v5 }
  0x8b   : > { %452 = vmatprep.mubr.f32.mxu0 %v278_v4  ;;  %572 = vmatprep.mubr.f32.mxu1 %v326_v6 }
  0x8e   : > { %453 = vmatmul.mubr.f32.gmra.mrb[10].mxu0 %v277_v7  ;;  %573 = vmatmul.mubr.f32.gmra.mrb[10].mxu1 %v325_v9 }
  0x8f   : > { %457 = vmatprep.mubr.f32.mxu0 %v280_v8  ;;  %577 = vmatprep.mubr.f32.mxu1 %v328_v10 }
  0x92   : > { %458 = vmatmul.mubr.f32.gmra.mrb[12].mxu0 %v279_v11  ;;  %578 = vmatmul.mubr.f32.gmra.mrb[12].mxu1 %v327_v13 }
  0x93   : > { %462 = vmatprep.mubr.f32.mxu0 %v282_v12  ;;  %582 = vmatprep.mubr.f32.mxu1 %v330_v14 }
  0x96   : > { %463 = vmatmul.mubr.f32.gmra.mrb[14].mxu0 %v281_v15  ;;  %583 = vmatmul.mubr.f32.gmra.mrb[14].mxu1 %v329_v17 }
  0x97   : > { %467 = vmatprep.mubr.f32.mxu0 %v284_v16 }
  0x9a   : > { %468 = vmatmul.mubr.f32.gmra.mrb[16].mxu0 %v283_v18 }
  0x9b   : > { %472 = vmatprep.mubr.f32.mxu0 %v286_v19 }
  0x9e   : > { %473 = vmatmul.mubr.f32.gmra.mrb[18].mxu0 %v285_v20 }
  0x9f   : > { %477 = vmatprep.mubr.f32.mxu0 %v288_v21 }
  0xa2   : > { %478 = vmatmul.mubr.f32.gmra.mrb[20].mxu0 %v287_v22 }
  0xa3   : > { %482 = vmatprep.mubr.f32.mxu0 %v290_v23 }
  0xa6   : > { %483 = vmatmul.mubr.f32.gmra.mrb[22].mxu0 %v289_v24 }
  0xa7   : > { %487 = vmatprep.mubr.f32.mxu0 %v292_v25 }
  0xaa   : > { %488 = vmatmul.mubr.f32.gmra.mrb[24].mxu0 %v291_v26 }
  0xab   : > { %492 = vmatprep.mubr.f32.mxu0 %v294_v27 }
  0xae   : > { %493 = vmatmul.mubr.f32.gmra.mrb[26].mxu0 %v293_v28 }
  0xaf   : > { %497 = vmatprep.mubr.f32.mxu0 %v296_v29 }
  0xb2   : > { %498 = vmatmul.mubr.f32.gmra.mrb[28].mxu0 %v295_v30 }
  0xb3   : > { %502 = vmatprep.mubr.f32.mxu0 %v298_v31 }
  0xb6   : > { %503 = vmatmul.mubr.f32.gmra.mrb[30].mxu0 %v297_v32 }
  0xb7   : > { %507 = vmatprep.mubr.f32.mxu0 %v300_v33 }
  0xba   : > { %508 = vmatmul.mubr.f32.gmra.mrb[32].mxu0 %v299_v34 }
  0xbb   : > { %512 = vmatprep.mubr.f32.mxu0 %v302_v35 }
  0xbe   : > { %513 = vmatmul.mubr.f32.gmra.mrb[34].mxu0 %v301_v36 }
  0xbf   : > { %517 = vmatprep.mubr.f32.mxu0 %v304_v37 }
  0xc2   : > { %518 = vmatmul.mubr.f32.gmra.mrb[36].mxu0 %v303_v38 }
  0xc3   : > { %522 = vmatprep.mubr.f32.mxu0 %v306_v39 }
  0xc6   : > { %523 = vmatmul.mubr.f32.gmra.mrb[38].mxu0 %v305_v40 }
  0xc7   : > { %527 = vmatprep.mubr.f32.mxu0 %v308_v41 }
  0xca   : > { %528 = vmatmul.mubr.f32.gmra.mrb[40].mxu0 %v307_v42 }
  0xcb   : > { %532 = vmatprep.mubr.f32.mxu0 %v310_v43 }
  0xce   : > { %533 = vmatmul.mubr.f32.gmra.mrb[42].mxu0 %v309_v44 }
  0xcf   : > { %537 = vmatprep.mubr.f32.mxu0 %v312_v47 }
  0xd2   : > { %538 = vmatmul.mubr.f32.gmra.mrb[44].mxu0 %v311_v49 }
  0xd3   : > { %542 = vmatprep.mubr.f32.mxu0 %v314_v50 }
  0xd6   : > { %543 = vmatmul.mubr.f32.gmra.mrb[46].mxu0 %v313_v51 }
 0x14d   : > { %v429_v52 = vpop.f32.mrb[0].mxu0  ;;  %v1795_v54 = vpop.f32.mrb[0].mxu1 }
 0x14e   : > { %v431_v53 = vpop.f32.mrb[1].mxu0  ;;  %1244 = vmatprep.mubr.msk.f32.mxu1 %vm597_vm0, %v429_v52  ;;  %v551_v55 = vpop.f32.mrb[1].mxu1  ;;  %v1847_v52 = vld [vmem:[%s1973_s3] ss:$0 sm:$0xff] }
 0x151   : > { %v434_v56 = vpop.f32.mrb[2].mxu0  ;;  %v1798_v58 = vpop.f32.mrb[2].mxu1 }
 0x152   : > { %v436_v57 = vpop.f32.mrb[3].mxu0  ;;  %1245 = vmatmul.mubr.msk.f32.vlgmr.msra.gmra.mrb[16].mxu1 %vm597_vm0, %v434_v56  ;;  %v556_v59 = vpop.f32.mrb[3].mxu1 }
 0x155   : > { %v439_v60 = vpop.f32.mrb[4].mxu0  ;;  %v1801_v62 = vpop.f32.mrb[4].mxu1 }
 0x156   : > { %v441_v61 = vpop.f32.mrb[5].mxu0  ;;  %1247 = vmatprep.mubr.msk.f32.mxu1 %vm597_vm0, %v439_v60  ;;  %v561_v63 = vpop.f32.mrb[5].mxu1 }
 0x159   : > { %v444_v0 = vpop.f32.mrb[6].mxu0  ;;  %v1804_v2 = vpop.f32.mrb[6].mxu1 }
 0x15a   : > { %v446_v1 = vpop.f32.mrb[7].mxu0  ;;  %1248 = vmatmul.mubr.msk.f32.gmra.mrb[18].mxu1 %vm597_vm0, %v444_v0  ;;  %v566_v3 = vpop.f32.mrb[7].mxu1 }
 0x15d   : > { %v449_v4 = vpop.f32.mrb[8].mxu0  ;;  %v1807_v6 = vpop.f32.mrb[8].mxu1 }
 0x15e   : > { %v451_v5 = vpop.f32.mrb[9].mxu0  ;;  %1250 = vmatprep.mubr.msk.f32.mxu1 %vm597_vm0, %v449_v4  ;;  %v571_v7 = vpop.f32.mrb[9].mxu1 }
 0x161   : > { %v454_v8 = vpop.f32.mrb[10].mxu0  ;;  %v1810_v10 = vpop.f32.mrb[10].mxu1 }
 0x162   : > { %v456_v9 = vpop.f32.mrb[11].mxu0  ;;  %1251 = vmatmul.mubr.msk.f32.gmra.mrb[20].mxu1 %vm597_vm0, %v454_v8  ;;  %v576_v11 = vpop.f32.mrb[11].mxu1 }
 0x165   : > { %v459_v12 = vpop.f32.mrb[12].mxu0  ;;  %v579_v14 = vpop.f32.mrb[12].mxu1 }
 0x166   : > { %v461_v13 = vpop.f32.mrb[13].mxu0  ;;  %1253 = vmatprep.mubr.msk.f32.mxu1 %vm597_vm0, %v459_v12  ;;  %v581_v15 = vpop.f32.mrb[13].mxu1 }
 0x169   : > { %v464_v16 = vpop.f32.mrb[14].mxu0  ;;  %v584_v18 = vpop.f32.mrb[14].mxu1 }
 0x16a   : > { %v466_v17 = vpop.f32.mrb[15].mxu0  ;;  %1254 = vmatmul.mubr.msk.f32.gmra.mrb[22].mxu1 %vm597_vm0, %v464_v16  ;;  %v586_v19 = vpop.f32.mrb[15].mxu1 }
 0x16d   : > { %v469_v20 = vpop.f32.mrb[16].mxu0 }
 0x16e   : > { %v471_v21 = vpop.f32.mrb[17].mxu0  ;;  %1256 = vmatprep.mubr.msk.f32.mxu1 %vm597_vm0, %v469_v20 }
 0x171   : > { %v474_v22 = vpop.f32.mrb[18].mxu0 }
 0x172   : > { %v476_v23 = vpop.f32.mrb[19].mxu0  ;;  %1257 = vmatmul.mubr.msk.f32.gmra.mrb[24].mxu1 %vm597_vm0, %v474_v22 }
 0x175   : > { %v479_v24 = vpop.f32.mrb[20].mxu0 }
 0x176   : > { %v481_v25 = vpop.f32.mrb[21].mxu0  ;;  %1259 = vmatprep.mubr.msk.f32.mxu1 %vm597_vm0, %v479_v24 }
 0x179   : > { %v484_v26 = vpop.f32.mrb[22].mxu0 }
 0x17a   : > { %v486_v27 = vpop.f32.mrb[23].mxu0  ;;  %1260 = vmatmul.mubr.msk.f32.gmra.mrb[26].mxu1 %vm597_vm0, %v484_v26 }
 0x17d   : > { %v489_v28 = vpop.f32.mrb[24].mxu0 }
 0x17e   : > { %v491_v29 = vpop.f32.mrb[25].mxu0  ;;  %1262 = vmatprep.mubr.msk.f32.mxu1 %vm597_vm0, %v489_v28 }
 0x181   : > { %v494_v30 = vpop.f32.mrb[26].mxu0 }
 0x182   : > { %v496_v31 = vpop.f32.mrb[27].mxu0  ;;  %1263 = vmatmul.mubr.msk.f32.gmra.mrb[28].mxu1 %vm597_vm0, %v494_v30 }
 0x185   : > { %v499_v32 = vpop.f32.mrb[28].mxu0 }
 0x186   : > { %v501_v33 = vpop.f32.mrb[29].mxu0  ;;  %1265 = vmatprep.mubr.msk.f32.mxu1 %vm597_vm0, %v499_v32 }
 0x189   : > { %v504_v34 = vpop.f32.mrb[30].mxu0 }
 0x18a   : > { %v506_v35 = vpop.f32.mrb[31].mxu0  ;;  %1266 = vmatmul.mubr.msk.f32.gmra.mrb[30].mxu1 %vm597_vm0, %v504_v34 }
 0x18d   : > { %v509_v36 = vpop.f32.mrb[32].mxu0 }
 0x18e   : > { %v511_v37 = vpop.f32.mrb[33].mxu0  ;;  %1268 = vmatprep.mubr.msk.f32.mxu1 %vm597_vm0, %v509_v36 }
 0x191   : > { %v514_v38 = vpop.f32.mrb[34].mxu0 }
 0x192   : > { %v516_v39 = vpop.f32.mrb[35].mxu0  ;;  %1269 = vmatmul.mubr.msk.f32.gmra.mrb[32].mxu1 %vm597_vm0, %v514_v38 }
 0x195   : > { %v519_v40 = vpop.f32.mrb[36].mxu0 }
 0x196   : > { %v521_v41 = vpop.f32.mrb[37].mxu0  ;;  %1271 = vmatprep.mubr.msk.f32.mxu1 %vm597_vm0, %v519_v40 }
 0x199   : > { %v524_v42 = vpop.f32.mrb[38].mxu0 }
 0x19a   : > { %v526_v43 = vpop.f32.mrb[39].mxu0  ;;  %1272 = vmatmul.mubr.msk.f32.gmra.mrb[34].mxu1 %vm597_vm0, %v524_v42 }
 0x19d   : > { %v529_v44 = vpop.f32.mrb[40].mxu0 }
 0x19e   : > { %v531_v45 = vpop.f32.mrb[41].mxu0  ;;  %1274 = vmatprep.mubr.msk.f32.mxu1 %vm597_vm0, %v529_v44 }
 0x1a1   : > { %v534_v46 = vpop.f32.mrb[42].mxu0 }
 0x1a2   : > { %v536_v47 = vpop.f32.mrb[43].mxu0  ;;  %1275 = vmatmul.mubr.msk.f32.gmra.mrb[36].mxu1 %vm597_vm0, %v534_v46 }
 0x1a5   : > { %v539_v48 = vpop.f32.mrb[44].mxu0 }
 0x1a6   : > { %v541_v49 = vpop.f32.mrb[45].mxu0  ;;  %1277 = vmatprep.mubr.msk.f32.mxu1 %vm597_vm0, %v539_v48 }
 0x1a9   : > { %v544_v50 = vpop.f32.mrb[46].mxu0 }
 0x1aa   : > { %v546_v51 = vpop.f32.mrb[47].mxu0  ;;  %1278 = vmatmul.mubr.msk.f32.gmra.mrb[38].mxu1 %vm597_vm0, %v544_v50 }
 0x1ab   : > { %1280 = vmatprep.mubr.msk.f32.mxu1 %vm597_vm0, %v1795_v54 }
 0x1ae   : > { %1281 = vmatmul.mubr.msk.f32.gmra.mrb[40].mxu1 %vm597_vm0, %v1798_v58 }
 0x1af   : > { %1283 = vmatprep.mubr.msk.f32.mxu1 %vm597_vm0, %v1801_v62 }
 0x1b2   : > { %1284 = vmatmul.mubr.msk.f32.gmra.mrb[42].mxu1 %vm597_vm0, %v1804_v2 }
 0x1b3   : > { %1286 = vmatprep.mubr.msk.f32.mxu1 %vm597_vm0, %v1807_v6 }
 0x1b6   : > { %1287 = vmatmul.mubr.msk.f32.gmra.mrb[44].mxu1 %vm597_vm0, %v1810_v10 }
 0x1b7   : > { %1289 = vmatprep.mubr.msk.f32.mxu1 %vm597_vm0, %v579_v14 }
 0x1ba   : > { %1290 = vmatmul.mubr.msk.f32.gmra.mrb[46].mxu1 %vm597_vm0, %v584_v18 }
 0x225   : > { %v1246_v53 = vpop.f32.mrb[16].mxu1 }
 0x226   : > { %v766_v54 = vadd.f32 %v1246_v53, %v1847_v52  ;;  %v760_v55 = vpop.f32.mrb[17].mxu1 }
 0x227   : > { %v761_v56 = vadd.f32 %v1847_v52, %v760_v55 }
 0x228   : > { %vm920_vm1 = vcmp.ge.f32.partialorder %v766_v54, 0.0  ;;  %v952_v57 = vmul.f32 0.2, %v766_v54 }
 0x229   : > { %vm919_vm3 = vcmp.ge.f32.partialorder %v761_v56, 0.0  ;;  %v951_v58 = vmul.f32 0.2, %v761_v56 }
 0x22a   : > { %v984_v59 = vsel %vm920_vm1, %v766_v54, %v952_v57 }
 0x22b   : > { %1017 = vst.msk [vmem:[%s1856_s29 + $0x8] sm:$0xff] %vm1015_vm2, %v984_v59  ;;  %v983_v60 = vsel %vm919_vm3, %v761_v56, %v951_v58 }
 0x22c   : > { %1016 = vst.msk [vmem:[%s1856_s29] sm:$0xff] %vm1015_vm2, %v983_v60 }
 0x22d   : > { %v1249_v61 = vpop.f32.mrb[18].mxu1 }
 0x22e   : > { %v776_v62 = vadd.f32 %v1249_v61, %v1847_v52  ;;  %v770_v63 = vpop.f32.mrb[19].mxu1 }
 0x22f   : > { %v771_v0 = vadd.f32 %v1847_v52, %v770_v63 }
 0x230   : > { %vm922_vm4 = vcmp.ge.f32.partialorder %v776_v62, 0.0  ;;  %v954_v1 = vmul.f32 0.2, %v776_v62 }
 0x231   : > { %vm921_vm5 = vcmp.ge.f32.partialorder %v771_v0, 0.0  ;;  %v953_v2 = vmul.f32 0.2, %v771_v0 }
 0x232   : > { %v986_v3 = vsel %vm922_vm4, %v776_v62, %v954_v1 }
 0x233   : > { %1019 = vst.msk [vmem:[%s1856_s29 + $0x18] sm:$0xff] %vm1015_vm2, %v986_v3  ;;  %v985_v4 = vsel %vm921_vm5, %v771_v0, %v953_v2 }
 0x234   : > { %1018 = vst.msk [vmem:[%s1856_s29 + $0x10] sm:$0xff] %vm1015_vm2, %v985_v4 }
 0x235   : > { %v1252_v5 = vpop.f32.mrb[20].mxu1 }
 0x236   : > { %v786_v6 = vadd.f32 %v1252_v5, %v1847_v52  ;;  %v780_v7 = vpop.f32.mrb[21].mxu1 }
 0x237   : > { %v781_v8 = vadd.f32 %v1847_v52, %v780_v7 }
 0x238   : > { %vm924_vm6 = vcmp.ge.f32.partialorder %v786_v6, 0.0  ;;  %v956_v9 = vmul.f32 0.2, %v786_v6 }
 0x239   : > { %vm923_vm7 = vcmp.ge.f32.partialorder %v781_v8, 0.0  ;;  %v955_v10 = vmul.f32 0.2, %v781_v8 }
 0x23a   : > { %v988_v11 = vsel %vm924_vm6, %v786_v6, %v956_v9 }
 0x23b   : > { %1021 = vst.msk [vmem:[%s1856_s29 + $0x28] sm:$0xff] %vm1015_vm2, %v988_v11  ;;  %v987_v12 = vsel %vm923_vm7, %v781_v8, %v955_v10 }
 0x23c   : > { %1020 = vst.msk [vmem:[%s1856_s29 + $0x20] sm:$0xff] %vm1015_vm2, %v987_v12 }
 0x23d   : > { %v1255_v13 = vpop.f32.mrb[22].mxu1 }
 0x23e   : > { %v796_v14 = vadd.f32 %v1255_v13, %v1847_v52  ;;  %v790_v15 = vpop.f32.mrb[23].mxu1 }
 0x23f   : > { %v791_v16 = vadd.f32 %v1847_v52, %v790_v15 }
 0x240   : > { %vm926_vm8 = vcmp.ge.f32.partialorder %v796_v14, 0.0  ;;  %v958_v17 = vmul.f32 0.2, %v796_v14 }
 0x241   : > { %vm925_vm9 = vcmp.ge.f32.partialorder %v791_v16, 0.0  ;;  %v957_v18 = vmul.f32 0.2, %v791_v16 }
 0x242   : > { %v990_v19 = vsel %vm926_vm8, %v796_v14, %v958_v17 }
 0x243   : > { %1023 = vst.msk [vmem:[%s1856_s29 + $0x38] sm:$0xff] %vm1015_vm2, %v990_v19  ;;  %v989_v20 = vsel %vm925_vm9, %v791_v16, %v957_v18 }
 0x244   : > { %1022 = vst.msk [vmem:[%s1856_s29 + $0x30] sm:$0xff] %vm1015_vm2, %v989_v20 }
 0x245   : > { %v1258_v21 = vpop.f32.mrb[24].mxu1 }
 0x246   : > { %v806_v22 = vadd.f32 %v1258_v21, %v1847_v52  ;;  %v800_v23 = vpop.f32.mrb[25].mxu1 }
 0x247   : > { %v801_v24 = vadd.f32 %v1847_v52, %v800_v23 }
 0x248   : > { %vm928_vm10 = vcmp.ge.f32.partialorder %v806_v22, 0.0  ;;  %v960_v25 = vmul.f32 0.2, %v806_v22 }
 0x249   : > { %vm927_vm11 = vcmp.ge.f32.partialorder %v801_v24, 0.0  ;;  %v959_v26 = vmul.f32 0.2, %v801_v24 }
 0x24a   : > { %v992_v27 = vsel %vm928_vm10, %v806_v22, %v960_v25 }
 0x24b   : > { %1025 = vst.msk [vmem:[%s1856_s29 + $0x48] sm:$0xff] %vm1015_vm2, %v992_v27  ;;  %v991_v28 = vsel %vm927_vm11, %v801_v24, %v959_v26 }
 0x24c   : > { %1024 = vst.msk [vmem:[%s1856_s29 + $0x40] sm:$0xff] %vm1015_vm2, %v991_v28 }
 0x24d   : > { %v1261_v29 = vpop.f32.mrb[26].mxu1 }
 0x24e   : > { %v816_v30 = vadd.f32 %v1261_v29, %v1847_v52  ;;  %v810_v31 = vpop.f32.mrb[27].mxu1 }
 0x24f   : > { %v811_v32 = vadd.f32 %v1847_v52, %v810_v31 }
 0x250   : > { %vm930_vm12 = vcmp.ge.f32.partialorder %v816_v30, 0.0  ;;  %v962_v33 = vmul.f32 0.2, %v816_v30 }
 0x251   : > { %vm929_vm13 = vcmp.ge.f32.partialorder %v811_v32, 0.0  ;;  %v961_v34 = vmul.f32 0.2, %v811_v32 }
 0x252   : > { %v994_v35 = vsel %vm930_vm12, %v816_v30, %v962_v33 }
 0x253   : > { %1027 = vst.msk [vmem:[%s1856_s29 + $0x58] sm:$0xff] %vm1015_vm2, %v994_v35  ;;  %v993_v36 = vsel %vm929_vm13, %v811_v32, %v961_v34 }
 0x254   : > { %1026 = vst.msk [vmem:[%s1856_s29 + $0x50] sm:$0xff] %vm1015_vm2, %v993_v36 }
 0x255   : > { %v1264_v37 = vpop.f32.mrb[28].mxu1 }
 0x256   : > { %v826_v38 = vadd.f32 %v1264_v37, %v1847_v52  ;;  %v820_v39 = vpop.f32.mrb[29].mxu1 }
 0x257   : > { %v821_v40 = vadd.f32 %v1847_v52, %v820_v39 }
 0x258   : > { %vm932_vm14 = vcmp.ge.f32.partialorder %v826_v38, 0.0  ;;  %v964_v41 = vmul.f32 0.2, %v826_v38 }
 0x259   : > { %vm931_vm15 = vcmp.ge.f32.partialorder %v821_v40, 0.0  ;;  %v963_v42 = vmul.f32 0.2, %v821_v40 }
 0x25a   : > { %v996_v43 = vsel %vm932_vm14, %v826_v38, %v964_v41 }
 0x25b   : > { %1029 = vst.msk [vmem:[%s1856_s29 + $0x68] sm:$0xff] %vm1015_vm2, %v996_v43  ;;  %v995_v44 = vsel %vm931_vm15, %v821_v40, %v963_v42 }
 0x25c   : > { %1028 = vst.msk [vmem:[%s1856_s29 + $0x60] sm:$0xff] %vm1015_vm2, %v995_v44 }
 0x25d   : > { %v1267_v45 = vpop.f32.mrb[30].mxu1 }
 0x25e   : > { %v836_v46 = vadd.f32 %v1267_v45, %v1847_v52  ;;  %v830_v47 = vpop.f32.mrb[31].mxu1 }
 0x25f   : > { %v831_v48 = vadd.f32 %v1847_v52, %v830_v47 }
 0x260   : > { %vm934_vm0 = vcmp.ge.f32.partialorder %v836_v46, 0.0  ;;  %v966_v49 = vmul.f32 0.2, %v836_v46 }
 0x261   : > { %vm933_vm1 = vcmp.ge.f32.partialorder %v831_v48, 0.0  ;;  %v965_v50 = vmul.f32 0.2, %v831_v48 }
 0x262   : > { %v998_v51 = vsel %vm934_vm0, %v836_v46, %v966_v49 }
 0x263   : > { %1031 = vst.msk [vmem:[%s1856_s29 + $0x78] sm:$0xff] %vm1015_vm2, %v998_v51  ;;  %v997_v53 = vsel %vm933_vm1, %v831_v48, %v965_v50 }
 0x264   : > { %1030 = vst.msk [vmem:[%s1856_s29 + $0x70] sm:$0xff] %vm1015_vm2, %v997_v53 }
 0x265   : > { %v1270_v54 = vpop.f32.mrb[32].mxu1 }
 0x266   : > { %v846_v55 = vadd.f32 %v1270_v54, %v1847_v52  ;;  %v840_v56 = vpop.f32.mrb[33].mxu1 }
 0x267   : > { %v841_v57 = vadd.f32 %v1847_v52, %v840_v56 }
 0x268   : > { %vm936_vm3 = vcmp.ge.f32.partialorder %v846_v55, 0.0  ;;  %v968_v58 = vmul.f32 0.2, %v846_v55 }
 0x269   : > { %vm935_vm4 = vcmp.ge.f32.partialorder %v841_v57, 0.0  ;;  %v967_v59 = vmul.f32 0.2, %v841_v57 }
 0x26a   : > { %v1000_v60 = vsel %vm936_vm3, %v846_v55, %v968_v58 }
 0x26b   : > { %1033 = vst.msk [vmem:[%s1856_s29 + $0x88] sm:$0xff] %vm1015_vm2, %v1000_v60  ;;  %v999_v61 = vsel %vm935_vm4, %v841_v57, %v967_v59 }
 0x26c   : > { %1032 = vst.msk [vmem:[%s1856_s29 + $0x80] sm:$0xff] %vm1015_vm2, %v999_v61 }
 0x26d   : > { %v1273_v62 = vpop.f32.mrb[34].mxu1 }
 0x26e   : > { %v856_v63 = vadd.f32 %v1273_v62, %v1847_v52  ;;  %v850_v0 = vpop.f32.mrb[35].mxu1 }
 0x26f   : > { %v851_v1 = vadd.f32 %v1847_v52, %v850_v0 }
 0x270   : > { %vm938_vm5 = vcmp.ge.f32.partialorder %v856_v63, 0.0  ;;  %v970_v2 = vmul.f32 0.2, %v856_v63 }
 0x271   : > { %vm937_vm6 = vcmp.ge.f32.partialorder %v851_v1, 0.0  ;;  %v969_v3 = vmul.f32 0.2, %v851_v1 }
 0x272   : > { %v1002_v4 = vsel %vm938_vm5, %v856_v63, %v970_v2 }
 0x273   : > { %1035 = vst.msk [vmem:[%s1856_s29 + $0x98] sm:$0xff] %vm1015_vm2, %v1002_v4  ;;  %v1001_v5 = vsel %vm937_vm6, %v851_v1, %v969_v3 }
 0x274   : > { %1034 = vst.msk [vmem:[%s1856_s29 + $0x90] sm:$0xff] %vm1015_vm2, %v1001_v5 }
 0x275   : > { %v1276_v6 = vpop.f32.mrb[36].mxu1 }
 0x276   : > { %v866_v7 = vadd.f32 %v1276_v6, %v1847_v52  ;;  %v860_v8 = vpop.f32.mrb[37].mxu1 }
 0x277   : > { %v861_v9 = vadd.f32 %v1847_v52, %v860_v8 }
 0x278   : > { %vm940_vm7 = vcmp.ge.f32.partialorder %v866_v7, 0.0  ;;  %v972_v10 = vmul.f32 0.2, %v866_v7 }
 0x279   : > { %vm939_vm8 = vcmp.ge.f32.partialorder %v861_v9, 0.0  ;;  %v971_v11 = vmul.f32 0.2, %v861_v9 }
 0x27a   : > { %v1004_v12 = vsel %vm940_vm7, %v866_v7, %v972_v10 }
 0x27b   : > { %1037 = vst.msk [vmem:[%s1856_s29 + $0xa8] sm:$0xff] %vm1015_vm2, %v1004_v12  ;;  %v1003_v13 = vsel %vm939_vm8, %v861_v9, %v971_v11 }
 0x27c   : > { %1036 = vst.msk [vmem:[%s1856_s29 + $0xa0] sm:$0xff] %vm1015_vm2, %v1003_v13 }
 0x27d   : > { %v1279_v14 = vpop.f32.mrb[38].mxu1 }
 0x27e   : > { %v876_v15 = vadd.f32 %v1279_v14, %v1847_v52  ;;  %v870_v16 = vpop.f32.mrb[39].mxu1 }
 0x27f   : > { %v871_v17 = vadd.f32 %v1847_v52, %v870_v16 }
 0x280   : > { %vm942_vm9 = vcmp.ge.f32.partialorder %v876_v15, 0.0  ;;  %v974_v18 = vmul.f32 0.2, %v876_v15 }
 0x281   : > { %vm941_vm10 = vcmp.ge.f32.partialorder %v871_v17, 0.0  ;;  %v973_v19 = vmul.f32 0.2, %v871_v17  ;;  %v1282_v20 = vpop.f32.mrb[40].mxu1 }
 0x282   : > { %v1006_v21 = vsel %vm942_vm9, %v876_v15, %v974_v18  ;;  %v886_v22 = vadd.f32 %v1282_v20, %v1847_v52  ;;  %v880_v23 = vpop.f32.mrb[41].mxu1 }
 0x283   : > { %1039 = vst.msk [vmem:[%s1856_s29 + $0xb8] sm:$0xff] %vm1015_vm2, %v1006_v21  ;;  %v1005_v24 = vsel %vm941_vm10, %v871_v17, %v973_v19  ;;  %v881_v25 = vadd.f32 %v1847_v52, %v880_v23 }
 0x284   : > { %1038 = vst.msk [vmem:[%s1856_s29 + $0xb0] sm:$0xff] %vm1015_vm2, %v1005_v24  ;;  %vm944_vm11 = vcmp.ge.f32.partialorder %v886_v22, 0.0  ;;  %v976_v26 = vmul.f32 0.2, %v886_v22 }
 0x285   : > { %vm943_vm12 = vcmp.ge.f32.partialorder %v881_v25, 0.0  ;;  %v975_v27 = vmul.f32 0.2, %v881_v25  ;;  %v1285_v28 = vpop.f32.mrb[42].mxu1 }
 0x286   : > { %v1008_v29 = vsel %vm944_vm11, %v886_v22, %v976_v26  ;;  %v896_v30 = vadd.f32 %v1285_v28, %v1847_v52  ;;  %v890_v31 = vpop.f32.mrb[43].mxu1 }
 0x287   : > { %1041 = vst.msk [vmem:[%s1856_s29 + $0xc8] sm:$0xff] %vm1015_vm2, %v1008_v29  ;;  %v1007_v32 = vsel %vm943_vm12, %v881_v25, %v975_v27  ;;  %v891_v33 = vadd.f32 %v1847_v52, %v890_v31 }
 0x288   : > { %1040 = vst.msk [vmem:[%s1856_s29 + $0xc0] sm:$0xff] %vm1015_vm2, %v1007_v32  ;;  %vm946_vm13 = vcmp.ge.f32.partialorder %v896_v30, 0.0  ;;  %v978_v34 = vmul.f32 0.2, %v896_v30 }
 0x289   : > { %vm945_vm14 = vcmp.ge.f32.partialorder %v891_v33, 0.0  ;;  %v977_v35 = vmul.f32 0.2, %v891_v33  ;;  %v1288_v36 = vpop.f32.mrb[44].mxu1 }
 0x28a   : > { %v1010_v37 = vsel %vm946_vm13, %v896_v30, %v978_v34  ;;  %v906_v38 = vadd.f32 %v1288_v36, %v1847_v52  ;;  %v900_v39 = vpop.f32.mrb[45].mxu1 }
 0x28b   : > { %1043 = vst.msk [vmem:[%s1856_s29 + $0xd8] sm:$0xff] %vm1015_vm2, %v1010_v37  ;;  %v1009_v40 = vsel %vm945_vm14, %v891_v33, %v977_v35  ;;  %v901_v41 = vadd.f32 %v1847_v52, %v900_v39 }
 0x28c   : > { %1042 = vst.msk [vmem:[%s1856_s29 + $0xd0] sm:$0xff] %vm1015_vm2, %v1009_v40  ;;  %vm948_vm15 = vcmp.ge.f32.partialorder %v906_v38, 0.0  ;;  %v980_v42 = vmul.f32 0.2, %v906_v38 }
 0x28d   : > { %vm947_vm0 = vcmp.ge.f32.partialorder %v901_v41, 0.0  ;;  %v979_v43 = vmul.f32 0.2, %v901_v41  ;;  %v1291_v44 = vpop.f32.mrb[46].mxu1 }
 0x28e   : > { %v1012_v45 = vsel %vm948_vm15, %v906_v38, %v980_v42  ;;  %v916_v46 = vadd.f32 %v1291_v44, %v1847_v52  ;;  %v910_v47 = vpop.f32.mrb[47].mxu1 }
 0x28f   : > { %1045 = vst.msk [vmem:[%s1856_s29 + $0xe8] sm:$0xff] %vm1015_vm2, %v1012_v45  ;;  %v1011_v48 = vsel %vm947_vm0, %v901_v41, %v979_v43  ;;  %v911_v49 = vadd.f32 %v1847_v52, %v910_v47 }
 0x290   : > { %1044 = vst.msk [vmem:[%s1856_s29 + $0xe0] sm:$0xff] %vm1015_vm2, %v1011_v48  ;;  %vm950_vm1 = vcmp.ge.f32.partialorder %v916_v46, 0.0  ;;  %v982_v50 = vmul.f32 0.2, %v916_v46 }
 0x291   : > { %vm949_vm3 = vcmp.ge.f32.partialorder %v911_v49, 0.0  ;;  %v981_v51 = vmul.f32 0.2, %v911_v49 }
 0x292   : > { %v1014_v53 = vsel %vm950_vm1, %v916_v46, %v982_v50 }
 0x293   : > { %1047 = vst.msk [vmem:[%s1856_s29 + $0xf8] sm:$0xff] %vm1015_vm2, %v1014_v53  ;;  %v1013_v54 = vsel %vm949_vm3, %v911_v49, %v981_v51 }
 0x294   : > { %1046 = vst.msk [vmem:[%s1856_s29 + $0xf0] sm:$0xff] %vm1015_vm2, %v1013_v54 }
 0x295 PF: > { %s17_s20 = sadd.s32 1, %s1514_s20   ;;  %s1978_s15 = smov %s1498_s16 }
 0x296   : > { %p14_p7 = scmp.ge.s32.totalorder %s17_s20, 4   ;;  %s1979_s16 = smov %s1502_s17 }
 0x297   : > { %s1980_s17 = smov %s1594_s27  ;;  %s1981_s18 = smov %s1510_s19 }
 0x298   : > { %s1982_s19 = smov %s1984_s22  ;;  %16 = sbr.rel (!%p14_p7) target bundleno = 4 (0x4), region = 79 }
 0x29f   :  { %1078 = vsyncpa [#allocation3], 1 }
 0x2a0   :  { %1080 = vsyncpa [#allocation3 + $0x1], 1 }

</bundles_post_ra>
